<compile_context>
chip_gen: v6e
topology: v6e:2x2x1
jax: 0.10.0
libtpu: 0.0.40
codegen_flags: <defaults>
</compile_context>

<pallas_src>
import jax
import jax.numpy as jnp
from jax import lax
from jax.experimental import pallas as pl
from jax.experimental.pallas import tpu as pltpu


def _build_kernel(TH, WPC, WC):
    """TH: output rows per grid step; WPC=(W+2)*C_in; WC=W*C_out."""

    def kernel(x_ref, a_ref, b_ref, o_ref):
        # x_ref: (1, H+2, WPC)  packed, zero-padded image (resident across h tiles)
        # a_ref: (3, WPC, WC)   banded combined weights, one slab per dy
        # b_ref: (1, WC)        combined bias, tiled along W
        # o_ref: (1, TH, WC)    lane-dense output tile
        h = pl.program_id(1)
        row0 = pl.multiple_of(h * TH, TH)

        acc = jnp.zeros((TH, WC), dtype=jnp.float32)
        for dy in range(3):  # 3 MXU matmuls, K = WPC
            tap = x_ref[0, pl.ds(row0 + dy, TH), :].astype(jnp.float32)   # (TH, WPC)
            acc = acc + jnp.dot(tap, a_ref[dy],
                                preferred_element_type=jnp.float32)
        acc = acc + b_ref[...].astype(jnp.float32)
        o_ref[0, :, :] = acc.astype(o_ref.dtype)

    return kernel


def deepwise_pointwise_conv(x_nchw, dw_w, dw_b, pw_w, pw_b, *, row_tile=8):
    """
    x_nchw: (N, C_in, H, W)      float32
    dw_w:   (C_in, 1, 3, 3)      depthwise Conv2d weight (groups=C_in)
    dw_b:   (C_in,)
    pw_w:   (C_out, C_in, 1, 1)  pointwise Conv2d weight
    pw_b:   (C_out,)
    returns (N, C_out, H, W)
    """
    N, C_in, H, W = x_nchw.shape
    C_out = pw_w.shape[0]
    TH = row_tile if (H % row_tile == 0) else H
    WPC = (W + 2) * C_in
    WC = W * C_out

    # ---- layout prep: NCHW -> NHWC -> zero pad -> pack (W,C) onto the lane axis ----
    x_nhwc = jnp.transpose(x_nchw, (0, 2, 3, 1))                       # (N, H, W, C_in)
    x_pad = jnp.pad(x_nhwc, ((0, 0), (1, 1), (1, 1), (0, 0)))          # (N, H+2, W+2, C_in)
    x_packed = x_pad.reshape(N, H + 2, WPC)                            # (N, H+2, (W+2)*C_in)

    # ---- fold depthwise into the pointwise matmul (exact) ----
    dw_khwc = jnp.transpose(dw_w[:, 0, :, :], (1, 2, 0)).astype(jnp.float32)   # (3,3,C_in)
    pw_mat = jnp.transpose(pw_w[:, :, 0, 0], (1, 0)).astype(jnp.float32)       # (C_in,C_out)
    w_comb = dw_khwc[:, :, :, None] * pw_mat[None, None, :, :]                 # (3,3,C_in,C_out)

    # Banded per-dy weights A[dy]: ((W+2)*C_in, W*C_out)
    a5 = jnp.zeros((3, W + 2, C_in, W, C_out), dtype=jnp.float32)
    for x in range(W):
        for dx in range(3):
            a5 = a5.at[:, x + dx, :, x, :].set(w_comb[:, dx, :, :])
    a_banded = a5.reshape(3, WPC, WC)

    # Combined bias: db @ pw + pb, tiled along W so index = x*C_out + co
    b_comb = dw_b.astype(jnp.float32) @ pw_mat + pw_b.astype(jnp.float32)       # (C_out,)
    b_tiled = jnp.tile(b_comb, (W,)).reshape(1, WC)

    kernel = _build_kernel(TH, WPC, WC)

    flops = 2 * N * H * W * C_in * (9 + C_out)          # logical depthwise + pointwise flops
    bytes_accessed = 4 * (x_packed.size + a_banded.size + b_tiled.size + N * H * WC)

    out_packed = pl.pallas_call(
        kernel,
        out_shape=jax.ShapeDtypeStruct((N, H, WC), x_nchw.dtype),
        grid_spec=pltpu.PrefetchScalarGridSpec(
            num_scalar_prefetch=0,
            grid=(N, H // TH),
            in_specs=[
                # padded image: block index constant along h -> DMA'd once per image
                pl.BlockSpec((1, H + 2, WPC), lambda n, h: (n, 0, 0)),
                pl.BlockSpec((3, WPC, WC), lambda n, h: (0, 0, 0)),
                pl.BlockSpec((1, WC), lambda n, h: (0, 0)),
            ],
            out_specs=pl.BlockSpec((1, TH, WC), lambda n, h: (n, h, 0)),
        ),
        compiler_params=pltpu.CompilerParams(
            dimension_semantics=("parallel", "parallel")),
        cost_estimate=pl.CostEstimate(
            flops=flops, transcendentals=0, bytes_accessed=bytes_accessed),
    )(x_packed, a_banded, b_tiled)

    out_nhwc = out_packed.reshape(N, H, W, C_out)
    return jnp.transpose(out_nhwc, (0, 3, 1, 2))                        # back to NCHW


def _reference(x_nchw, dw_w, dw_b, pw_w, pw_b):
    """Pure-JAX reference matching PyTorch Conv2d semantics (NCHW)."""
    C_in = x_nchw.shape[1]
    dn = lax.conv_dimension_numbers(x_nchw.shape, dw_w.shape, ("NCHW", "OIHW", "NCHW"))
    out = lax.conv_general_dilated(
        x_nchw, dw_w, window_strides=(1, 1), padding=((1, 1), (1, 1)),
        dimension_numbers=dn, feature_group_count=C_in)
    out = out + dw_b.reshape(1, -1, 1, 1)
    dn2 = lax.conv_dimension_numbers(out.shape, pw_w.shape, ("NCHW", "OIHW", "NCHW"))
    out = lax.conv_general_dilated(
        out, pw_w, window_strides=(1, 1), padding=((0, 0), (0, 0)),
        dimension_numbers=dn2)
    out = out + pw_b.reshape(1, -1, 1, 1)
    return out


if __name__ == "__main__":
    # Deterministic synthetic parameters / inputs (no checkpoint loading).
    N, C_in, H, W = 2, 4, 16, 16
    C_out = 8

    key = jax.random.PRNGKey(0)
    k_x, k_dw, k_db, k_pw, k_pb = jax.random.split(key, 5)

    x = jax.random.normal(k_x, (N, C_in, H, W), dtype=jnp.float32)
    dw_w = jax.random.normal(k_dw, (C_in, 1, 3, 3), dtype=jnp.float32) * 0.1
    dw_b = jax.random.normal(k_db, (C_in,), dtype=jnp.float32) * 0.1
    pw_w = jax.random.normal(k_pw, (C_out, C_in, 1, 1), dtype=jnp.float32) * 0.1
    pw_b = jax.random.normal(k_pb, (C_out,), dtype=jnp.float32) * 0.1

    out = deepwise_pointwise_conv(x, dw_w, dw_b, pw_w, pw_b)
    out = jax.block_until_ready(out)

    ref = _reference(x, dw_w, dw_b, pw_w, pw_b)
    assert out.shape == (N, C_out, H, W)
    assert jnp.allclose(out, ref, atol=1e-4, rtol=1e-4), "mismatch vs reference conv"

    print("KERNEL_OK")
</pallas_src>

<mosaic_0001>
module attributes {stable_mosaic.version = 11 : i64} {
  func.func @kernel(%arg0: i32, %arg1: i32, %arg2: memref<1x18x72xf32, #tpu.memory_space<vmem>>, %arg3: memref<3x72x128xf32, #tpu.memory_space<vmem>>, %arg4: memref<1x128xf32, #tpu.memory_space<vmem>>, %arg5: memref<1x8x128xf32, #tpu.memory_space<vmem>>) attributes {dimension_semantics = [#tpu.dimension_semantics<parallel>, #tpu.dimension_semantics<parallel>], iteration_bounds = array<i64: 2, 2>, scalar_prefetch = 0 : i64, scratch_operands = 0 : i64, tpu.core_type = #tpu.core_type<tc>, window_params = [{transform_indices = @transform_0, window_bounds = array<i64: 1, 18, 72>}, {pipeline_mode = #tpu.pipeline_mode<synchronous>, transform_indices = @transform_1, window_bounds = array<i64: 3, 72, 128>}, {pipeline_mode = #tpu.pipeline_mode<synchronous>, transform_indices = @transform_2, window_bounds = array<i64: 1, 128>}, {transform_indices = @transform_3, window_bounds = array<i64: 1, 8, 128>}]} {
    %c8_i32 = arith.constant 8 : i32
    %0 = arith.muli %arg1, %c8_i32 : i32
    %1 = tpu.assume_multiple %0, 8 : i32
    %cst = arith.constant 0.000000e+00 : f32
    %2 = vector.broadcast %cst : f32 to vector<8x128xf32>
    %c0_i32 = arith.constant 0 : i32
    %3 = arith.addi %1, %c0_i32 : i32
    %c0 = arith.constant 0 : index
    %4 = arith.index_cast %3 : i32 to index
    %c0_0 = arith.constant 0 : index
    %5 = vector.load %arg2[%c0, %4, %c0_0] : memref<1x18x72xf32, #tpu.memory_space<vmem>>, vector<1x8x72xf32>
    %6 = vector.shape_cast %5 : vector<1x8x72xf32> to vector<8x72xf32>
    %c0_1 = arith.constant 0 : index
    %c0_2 = arith.constant 0 : index
    %c0_3 = arith.constant 0 : index
    %7 = vector.load %arg3[%c0_1, %c0_2, %c0_3] : memref<3x72x128xf32, #tpu.memory_space<vmem>>, vector<1x72x128xf32>
    %8 = vector.shape_cast %7 : vector<1x72x128xf32> to vector<72x128xf32>
    %cst_4 = arith.constant dense<0.000000e+00> : vector<8x128xf32>
    %9 = tpu.matmul %6, %8, %cst_4 {dimension_numbers = #tpu.dot_dimension_numbers<[1], [0], [0], [1], [0, 0, 1, 1], [], []>} : vector<8x72xf32>, vector<72x128xf32>, vector<8x128xf32> -> vector<8x128xf32>
    %10 = arith.addf %2, %9 : vector<8x128xf32>
    %c1_i32 = arith.constant 1 : i32
    %11 = arith.addi %1, %c1_i32 : i32
    %c0_5 = arith.constant 0 : index
    %12 = arith.index_cast %11 : i32 to index
    %c0_6 = arith.constant 0 : index
    %13 = vector.load %arg2[%c0_5, %12, %c0_6] : memref<1x18x72xf32, #tpu.memory_space<vmem>>, vector<1x8x72xf32>
    %14 = vector.shape_cast %13 : vector<1x8x72xf32> to vector<8x72xf32>
    %c1 = arith.constant 1 : index
    %c0_7 = arith.constant 0 : index
    %c0_8 = arith.constant 0 : index
    %15 = vector.load %arg3[%c1, %c0_7, %c0_8] : memref<3x72x128xf32, #tpu.memory_space<vmem>>, vector<1x72x128xf32>
    %16 = vector.shape_cast %15 : vector<1x72x128xf32> to vector<72x128xf32>
    %cst_9 = arith.constant dense<0.000000e+00> : vector<8x128xf32>
    %17 = tpu.matmul %14, %16, %cst_9 {dimension_numbers = #tpu.dot_dimension_numbers<[1], [0], [0], [1], [0, 0, 1, 1], [], []>} : vector<8x72xf32>, vector<72x128xf32>, vector<8x128xf32> -> vector<8x128xf32>
    %18 = arith.addf %10, %17 : vector<8x128xf32>
    %c2_i32 = arith.constant 2 : i32
    %19 = arith.addi %1, %c2_i32 : i32
    %c0_10 = arith.constant 0 : index
    %20 = arith.index_cast %19 : i32 to index
    %c0_11 = arith.constant 0 : index
    %21 = vector.load %arg2[%c0_10, %20, %c0_11] : memref<1x18x72xf32, #tpu.memory_space<vmem>>, vector<1x8x72xf32>
    %22 = vector.shape_cast %21 : vector<1x8x72xf32> to vector<8x72xf32>
    %c2 = arith.constant 2 : index
    %c0_12 = arith.constant 0 : index
    %c0_13 = arith.constant 0 : index
    %23 = vector.load %arg3[%c2, %c0_12, %c0_13] : memref<3x72x128xf32, #tpu.memory_space<vmem>>, vector<1x72x128xf32>
    %24 = vector.shape_cast %23 : vector<1x72x128xf32> to vector<72x128xf32>
    %cst_14 = arith.constant dense<0.000000e+00> : vector<8x128xf32>
    %25 = tpu.matmul %22, %24, %cst_14 {dimension_numbers = #tpu.dot_dimension_numbers<[1], [0], [0], [1], [0, 0, 1, 1], [], []>} : vector<8x72xf32>, vector<72x128xf32>, vector<8x128xf32> -> vector<8x128xf32>
    %26 = arith.addf %18, %25 : vector<8x128xf32>
    %c0_15 = arith.constant 0 : index
    %c0_16 = arith.constant 0 : index
    %27 = vector.load %arg4[%c0_15, %c0_16] : memref<1x128xf32, #tpu.memory_space<vmem>>, vector<1x128xf32>
    %28 = vector.broadcast %27 : vector<1x128xf32> to vector<8x128xf32>
    %29 = arith.addf %26, %28 : vector<8x128xf32>
    %c0_17 = arith.constant 0 : index
    %c0_18 = arith.constant 0 : index
    %c0_19 = arith.constant 0 : index
    %30 = vector.load %arg5[%c0_17, %c0_18, %c0_19] : memref<1x8x128xf32, #tpu.memory_space<vmem>>, vector<1x8x128xf32>
    %31 = vector.shape_cast %30 : vector<1x8x128xf32> to vector<8x128xf32>
    %32 = vector.shape_cast %29 : vector<8x128xf32> to vector<1x8x128xf32>
    tpu.vector_store %arg5[%c0_17, %c0_18, %c0_19], %32 {strides = array<i32>} : memref<1x8x128xf32, #tpu.memory_space<vmem>>, vector<1x8x128xf32>,
    return
  }
  func.func @transform_0(%arg0: i32, %arg1: i32) -> (i32, i32, i32) {
    %c0_i32 = arith.constant 0 : i32
    %c0_i32_0 = arith.constant 0 : i32
    %c0_i32_1 = arith.constant 0 : i32
    return %arg0, %c0_i32, %c0_i32_0 : i32, i32, i32
  }
  func.func @transform_1(%arg0: i32, %arg1: i32) -> (i32, i32, i32) {
    %c0_i32 = arith.constant 0 : i32
    %c0_i32_0 = arith.constant 0 : i32
    %c0_i32_1 = arith.constant 0 : i32
    %c0_i32_2 = arith.constant 0 : i32
    return %c0_i32, %c0_i32_0, %c0_i32_1 : i32, i32, i32
  }
  func.func @transform_2(%arg0: i32, %arg1: i32) -> (i32, i32) {
    %c0_i32 = arith.constant 0 : i32
    %c0_i32_0 = arith.constant 0 : i32
    %c0_i32_1 = arith.constant 0 : i32
    return %c0_i32, %c0_i32_0 : i32, i32
  }
  func.func @transform_3(%arg0: i32, %arg1: i32) -> (i32, i32, i32) {
    %c0_i32 = arith.constant 0 : i32
    %c0_i32_0 = arith.constant 0 : i32
    return %arg0, %arg1, %c0_i32 : i32, i32, i32
  }
}

</mosaic_0001>

<bundles_post_ra>
// kernel: tpu_custom_call.1
= control target key start
LH: loop header
LB: loop body
LE: loop exit
PB: predicated region body
PF: predicated region fallthrough
CT: control target
= control target key end

     0   :  { %8 = vsyncpa [#allocation3], 0  ;;  %s1123_s0 = inlined_call_operand.vmem [shape: f32[2,18,72], index: 0, kind: input, shape index: {}]   ;;  %s1124_s1 = inlined_call_operand.hbm [shape: f32[3,72,128], index: 1, kind: input, shape index: {}]   ;;  %s1125_s2 = inlined_call_operand.vmem [shape: f32[1,128], index: 2, kind: input, shape index: {}]   ;;  %s1126_s3 = inlined_call_operand.hbm [shape: f32[2,16,128], index: 3, kind: output, shape index: {}]  }
   0x1   :  { %9 = vsyncpa [#allocation4], 0 }
   0x2   :  { %11 = vsyncpa [#allocation4 + $0x1], 0  ;;  %s927_s12 = smov 0   ;;  %s929_s13 = smov 0  }
   0x3   :  { %s931_s14 = smov 0   ;;  %s933_s15 = smov 0  }
   0x4   :  { %s935_s16 = smov 0   ;;  %s937_s17 = smov 0  }
   0x5   :  { %s939_s18 = smov 0   ;;  %s941_s19 = smov 0  }
   0x6 LB: > { %s574_s20 = sadd.s32 4294967295, %s899_s19   ;;  %s575_s21 = sadd.s32 4294967294, %s899_s19   ;;  %s899_s19 = sphi %s941_s19, %s17_s19   ;;  %s895_s18 = sphi %s939_s18, %s1138_s18   ;;  %s891_s17 = sphi %s937_s17, %s1137_s17   ;;  %s887_s16 = sphi %s935_s16, %s1136_s16   ;;  %s883_s15 = sphi %s933_s15, %s1135_s15   ;;  %s879_s14 = sphi %s931_s14, %s1134_s14   ;;  %s875_s13 = sphi %s929_s13, %s1133_s13   ;;  %s871_s12 = sphi %s927_s12, %s1132_s12  }
   0x7   : > { %s26_s22 = sadd.s32 1, %s891_s17  ;;  %s29_s23 = sadd.s32 1, %s895_s18 }
   0x8   : > { %p27_p0 = scmp.ge.s32.totalorder %s26_s22, 2  ;;  %s106_s24 = sadd.s32 1, %s879_s14 }
   0x9   : > { %p116_p1 = scmp.ne.s32.totalorder %s879_s14, %s875_s13  ;;  %p117_p2 = scmp.eq.s32.totalorder %s574_s20, 3 }
   0xa   : > { %s1140_s22 = smov (%p27_p0, %s26_s22), 0  ;;  %s1142_s23 = smov (!%p27_p0, %s29_s23), %s895_s18 }
   0xb   : > { %s102_s25 = ssub.s32 %s891_s17, %s1140_s22  ;;  %p979_p3 = por %p117_p2, %p116_p1 }
   0xc   : > { %p31_p4 = scmp.ge.s32.totalorder %s1142_s23, 2  ;;  %p122_p5 = scmp.ne.s32.totalorder %s875_s13, %s871_s12 }
   0xd   : > { %p123_p6 = scmp.eq.s32.totalorder %s575_s21, 3  ;;  %p576_p7 = scmp.ge.s32.totalorder %s899_s19, 1 }
   0xe   : > { %s1144_s23 = smov (%p31_p4, %s1142_s23), 0  ;;  %p130_p9 = scmp.lt.s32.totalorder %s899_s19, 5 }
   0xf   : > { %p988_p8 = por %p123_p6, %p122_p5  ;;  %s101_s28 = ssub.s32 %s895_s18, %s1144_s23 }
  0x10   : > { %s103_s29 = sor.u32 %s102_s25, %s101_s28  ;;  %p995_p10 = pnand %p576_p7, %p130_p9 }
  0x11   : > { %p104_p11 = scmp.eq.s32.totalorder %s103_s29, 0  ;;  %p999_p12 = scmp.eq.s32.totalorder %s574_s20, 0 }
  0x12   : > { %p697_p13 = pneg %p995_p10  ;;  %s901_s6 = smov [#allocation2]  }
  0x13   : > { %s1006_s5 = scalar_select %p104_p11, %s879_s14, %s106_s24  }
  0x14   : > { %s142_s7 = sshll.u32 %s901_s6, 4  ;;  %p1010_p0 = pnand %p999_p12, %p697_p13  ;;  %s143_s7 = int_to_ptr.vmem [resolvable:$true] %s142_s7 }
  0x15   : > { %s788_s9 = scalar_lea.vmem %s143_s7, 3456  ;;  %p796_p6 = scmp.lt.s32.totalorder %s143_s7, %s143_s7 }
  0x16   : > { %p779_p1 = pneg %p1010_p0  ;;  %p789_p2 = scmp.ne.s32.totalorder %s143_s7, %s788_s9 }
  0x17   : > { %p797_p7 = scmp.lt.s32.totalorder %s788_s9, %s788_s9 }
  0x18   : > { %p791_p4 = pnand %p789_p2, %p779_p1 }
  0x19   : > { %p798_p9 = por %p797_p7, %p796_p6 }
  0x1a   : > { %p792_p5 = pneg %p791_p4 }
  0x1c   : > { %p799_p11 = pnand %p798_p9, %p792_p5 }
  0x1e   : > { %802 = shalt.err (!%p799_p11)
}
  0x1f   : > { %s902_s10 = smov 128   ;;  %s903_s11 = smov 8  }
  0x20   : > { %700 = dma.hbm_to_vmem [thread:$0]  (!%p1010_p0), %s1124_s1, 3456, %s143_s7, [#allocation3], %s902_s10, %s902_s10, %s903_s11  }
  0x21   : > { %169 = sbr.rel (%p995_p10) target bundleno = 287 (0x11f), region = 32 }
  0x26   : > { %862 = dma.done.wait (%p999_p12), [#allocation3], 3456  }
  0x27   : > { %864 = vsyncadd (%p999_p12), [#allocation3], 4294963840  ;;  %v904_v0 = vmov 0.0   ;;  %vm905_vm0 = vmmov 0   ;;  %p193_p10 = scmp.lt.s32.totalorder %s887_s16, 1  ;;  %v222_v1 = vld [vmem:[#allocation2 + $0x88] sm:$0xff] }
  0x28   : > { %627 = vmatprep.subr.mxu0 %v904_v0  ;;  %648 = vmatprep.subr.mxu1 %v904_v0  ;;  %v209_v2 = vld [vmem:[#allocation2 + $0x40] sm:$0xff]  ;;  %v208_v4 = vld [vmem:[#allocation2 + $0x38] sm:$0xff]  ;;  %v207_v6 = vld [vmem:[#allocation2 + $0x30] sm:$0xff]  ;;  %s583_s4 = sshll.u32 %s883_s15, 3  ;;  %vm223_vm1 = vcmask 588800   ;;  %s190_s7 = sand.u32 1, %s875_s13  }
  0x29   : > { %645 = vmatprep.mubr.msk.f32.mxu0 %vm905_vm0, %v904_v0  ;;  %666 = vmatprep.mubr.msk.f32.mxu1 %vm905_vm0, %v904_v0  ;;  %v221_v3 = vld [vmem:[#allocation2 + $0x80] sm:$0xff]  ;;  %s194_s24 = scalar_select %p193_p10, %s887_s16, 1  ;;  %v220_v5 = vld [vmem:[#allocation2 + $0x78] sm:$0xff]  ;;  %v219_v7 = vld [vmem:[#allocation2 + $0x70] sm:$0xff] }
  0x2a   : > { %628 = vmatpush3.msra.mxu0 %v222_v1  ;;  %649 = vmatpush3.msra.mxu1 %v209_v2  ;;  %v206_v8 = vld [vmem:[#allocation2 + $0x28] sm:$0xff]  ;;  %v205_v10 = vld [vmem:[#allocation2 + $0x20] sm:$0xff]  ;;  %v204_v12 = vld [vmem:[#allocation2 + $0x18] sm:$0xff]  ;;  %s581_s8 = sshll.u32 %s190_s7, 3  ;;  %s593_s9 = sshll.u32 %s887_s16, 1 }
  0x2b   : > { %629 = vmatprep.subr.mxu0 %v904_v0  ;;  %650 = vmatprep.subr.mxu1 %v904_v0  ;;  %s690_s25 = smul.u32 24, %s194_s24  ;;  %v218_v9 = vld [vmem:[#allocation2 + $0x68] sm:$0xff]  ;;  %v217_v11 = vld [vmem:[#allocation2 + $0x60] sm:$0xff]  ;;  %v216_v13 = vld [vmem:[#allocation2 + $0x58] sm:$0xff]  ;;  %s478_s10 = sadd.s32 %s883_s15, %s593_s9 }
  0x2c   : > { %630 = vmatpush3.msra.mxu0 %v221_v3  ;;  %651 = vmatpush3.msra.mxu1 %v208_v4  ;;  %v203_v14 = vld [vmem:[#allocation2 + $0x10] sm:$0xff]  ;;  %v202_v16 = vld [vmem:[#allocation2 + $0x8] sm:$0xff]  ;;  %v201_v18 = vld [vmem:[#allocation2] sm:$0xff]  ;;  %s594_s21 = sshll.u32 %s478_s10, 7  ;;  %s192_s24 = scalar_lea.vmem [#allocation5], %s581_s8 }
  0x2d   : > { %631 = vmatprep.subr.mxu0 %v904_v0  ;;  %652 = vmatprep.subr.mxu1 %v904_v0  ;;  %s197_s30 = scalar_lea.vmem %s1123_s0, %s690_s25  ;;  %v215_v15 = vld [vmem:[#allocation2 + $0x50] sm:$0xff]  ;;  %v214_v17 = vld [vmem:[#allocation2 + $0x48] sm:$0xff]  ;;  %v380_v23 = vld [vmem:[#allocation2 + $0xc0] sm:$0xff]  ;;  %s482_s25 = sshll.u32 %s192_s24, 4  ;;  %s483_s25 = int_to_ptr.vmem [resolvable:$true] %s482_s25 }
  0x2e   : > { %632 = vmatpush3.msra.mxu0 %v220_v5  ;;  %653 = vmatpush3.msra.mxu1 %v207_v6  ;;  %s1051_s6 = scalar_lea.vmem %s197_s30, %s583_s4  ;;  %v382_v21 = vld [vmem:[#allocation2 + $0xd0] sm:$0xff]  ;;  %v381_v22 = vld [vmem:[#allocation2 + $0xc8] sm:$0xff]  ;;  %v379_v24 = vld [vmem:[#allocation2 + $0xb8] sm:$0xff]  ;;  %s480_s30 = scalar_lea.hbm %s1126_s3, %s594_s21 }
  0x2f   : > { %633 = vmatprep.subr.mxu0 %v904_v0  ;;  %654 = vmatprep.subr.mxu1 %v904_v0  ;;  %v585_v19 = vld [vmem:[%s1051_s6 + $0x1] sm:$0xff]  ;;  %v378_v25 = vld [vmem:[#allocation2 + $0xb0] sm:$0xff]  ;;  %v375_v28 = vld [vmem:[#allocation2 + $0x98] sm:$0xff]  ;;  %s467_s15 = scalar_lea.sflag [#allocation4], %s190_s7  ;;  %s803_s16 = scalar_lea.vmem %s483_s25, 128 }
  0x30   : > { %634 = vmatpush3.msra.mxu0 %v219_v7  ;;  %655 = vmatpush3.msra.mxu1 %v206_v8  ;;  %v200_v20 = vld [vmem:[%s1051_s6] sm:$0xff]  ;;  %v377_v26 = vld [vmem:[#allocation2 + $0xa8] sm:$0xff]  ;;  %v374_v29 = vld [vmem:[#allocation2 + $0x90] sm:$0xff]  ;;  %p804_p12 = scmp.ne.s32.totalorder %s483_s25, %s803_s16  ;;  %s906_s4 = smov [#allocation5]  }
  0x31   : > { %635 = vmatprep.subr.mxu0 %v904_v0  ;;  %656 = vmatprep.subr.mxu1 %v904_v0  ;;  %v376_v27 = vld [vmem:[#allocation2 + $0xa0] sm:$0xff] }
  0x32   : > { %636 = vmatpush3.msra.mxu0 %v218_v9  ;;  %657 = vmatpush3.msra.mxu1 %v205_v10  ;;  %v589_v30 = vld [vmem:[%s1051_s6 + $0x2] sm:$0xff]  ;;  %v591_v37 = vld [vmem:[%s1125_s2] ss:$0 sm:$0xff]  ;;  %p805_p13 = pnand %p804_p12, %p979_p3  ;;  %s807_s6 = sshll.u32 %s906_s4, 4  ;;  %s808_s6 = int_to_ptr.vmem [resolvable:$false] %s807_s6 }
  0x33   : > { %637 = vmatprep.subr.mxu0 %v904_v0  ;;  %658 = vmatprep.subr.mxu1 %v904_v0  ;;  %s809_s8 = scalar_lea.vmem %s808_s6, 256  ;;  %p810_p1 = scmp.lt.s32.totalorder %s483_s25, %s808_s6 }
  0x34   : > { %638 = vmatpush3.msra.mxu0 %v217_v11  ;;  %659 = vmatpush3.msra.mxu1 %v204_v12  ;;  %p806_p0 = pneg %p805_p13  ;;  %p811_p2 = scmp.lt.s32.totalorder %s809_s8, %s803_s16 }
  0x35   : > { %639 = vmatprep.subr.mxu0 %v904_v0  ;;  %660 = vmatprep.subr.mxu1 %v904_v0 }
  0x36   : > { %640 = vmatpush3.msra.mxu0 %v216_v13  ;;  %661 = vmatpush3.msra.mxu1 %v203_v14  ;;  %p812_p4 = por %p811_p2, %p810_p1 }
  0x37   : > { %641 = vmatprep.subr.mxu0 %v904_v0  ;;  %662 = vmatprep.subr.mxu1 %v904_v0 }
  0x38   : > { %642 = vmatpush3.msra.mxu0 %v215_v15  ;;  %663 = vmatpush3.msra.mxu1 %v202_v16  ;;  %p813_p5 = pnand %p812_p4, %p806_p0 }
  0x39   : > { %643 = vmatprep.subr.mxu0 %v904_v0  ;;  %664 = vmatprep.subr.mxu1 %v904_v0 }
  0x3a   : > { %644 = vmatpush3.msra.mxu0 %v214_v17  ;;  %665 = vmatpush3.msra.mxu1 %v201_v18 }
  0x3b   : > { %646 = vmatmul.mubr.msk.f32.vlgmr.msra.gmra.mxu0 %vm223_vm1, %v585_v19  ;;  %669 = vmatprep.subr.mxu0 %v904_v0 }
  0x3c   : > { %667 = vmatmul.mubr.msk.f32.vlgmr.msra.gmra.mxu1 %vm223_vm1, %v200_v20  ;;  %670 = vmatpush3.msra.mxu0 %v382_v21 }
  0x3d   : > { %671 = vmatprep.subr.mxu0 %v904_v0  ;;  %687 = vmatprep.mubr.msk.f32.mxu0 %vm905_vm0, %v904_v0 }
  0x3e   : > { %672 = vmatpush3.msra.mxu0 %v381_v22 }
  0x3f   : > { %673 = vmatprep.subr.mxu0 %v904_v0 }
  0x40   : > { %674 = vmatpush3.msra.mxu0 %v380_v23 }
  0x41   : > { %675 = vmatprep.subr.mxu0 %v904_v0 }
  0x42   : > { %676 = vmatpush3.msra.mxu0 %v379_v24 }
  0x43   : > { %677 = vmatprep.subr.mxu0 %v904_v0 }
  0x44   : > { %678 = vmatpush3.msra.mxu0 %v378_v25 }
  0x45   : > { %679 = vmatprep.subr.mxu0 %v904_v0 }
  0x46   : > { %680 = vmatpush3.msra.mxu0 %v377_v26 }
  0x47   : > { %681 = vmatprep.subr.mxu0 %v904_v0 }
  0x48   : > { %682 = vmatpush3.msra.mxu0 %v376_v27 }
  0x49   : > { %683 = vmatprep.subr.mxu0 %v904_v0 }
  0x4a   : > { %684 = vmatpush3.msra.mxu0 %v375_v28 }
  0x4b   : > { %685 = vmatprep.subr.mxu0 %v904_v0 }
  0x4c   : > { %686 = vmatpush3.msra.mxu0 %v374_v29 }
  0x4d   : > { %688 = vmatmul.mubr.msk.f32.vlgmr.msra.gmra.mxu0 %vm223_vm1, %v589_v30 }
  0xfb   : > { %v293_v31 = vpop.f32.mrf.mxu0 }
  0xfc   : > { %v366_v32 = vpop.f32.mrf.mxu1 }
  0xfd   : > { %v647_v33 = vpop.f32.mrf.mxu0  ;;  %v367_v35 = vadd.f32 %v366_v32, %v293_v31 }
  0xfe   : > { %v668_v34 = vpop.f32.mrf.mxu1 }
 0x10d   : > { %v452_v36 = vpop.f32.mrf.mxu0 }
 0x10e   : > { %v456_v38 = vadd.f32 %v452_v36, %v367_v35 }
 0x10f   : > { %v689_v39 = vpop.f32.mrf.mxu0 }
 0x110   : > { %v464_v40 = vadd.f32 %v591_v37, %v456_v38 }
 0x112   : > { %465 = vst [vmem:[%s192_s24] sm:$0xff] %v464_v40 }
 0x113   : > { %816 = shalt.err (!%p813_p5)
}
 0x114   : > { %s817_s9 = scalar_lea.hbm %s480_s30, 128  ;;  %s821_s11 = scalar_lea.hbm %s1126_s3, 512 }
 0x115   : > { %p818_p6 = scmp.ne.s32.totalorder %s480_s30, %s817_s9  ;;  %p822_p11 = scmp.lt.s32.totalorder %s480_s30, %s1126_s3 }
 0x116   : > { %p823_p10 = scmp.lt.s32.totalorder %s821_s11, %s817_s9 }
 0x117   : > { %p819_p7 = pnand %p818_p6, %p979_p3 }
 0x118   : > { %p824_p12 = por %p823_p10, %p822_p11 }
 0x119   : > { %p820_p9 = pneg %p819_p7 }
 0x11b   : > { %p825_p13 = pnand %p824_p12, %p820_p9 }
 0x11d   : > { %828 = shalt.err (!%p825_p13)
}
 0x11e   : > { %695 = dma.vmem_to_hbm [thread:$0]  (%p979_p3), %s483_s25, 128, %s480_s30, %s467_s15  }
 0x11f PF: > { %p707_p0 = scmp.ge.s32.totalorder %s899_s19, 2  ;;  %s494_s24 = sand.u32 1, %s871_s12  }
 0x120   : > { %s495_s28 = scalar_lea.sflag [#allocation4], %s494_s24 }
 0x121   : > { %p702_p1 = pnand %p707_p0, %p988_p8 }
 0x123   : > { %p703_p2 = pneg %p702_p1 }
 0x125   : > { %866 = dma.done.wait (%p703_p2), %s495_s28, 128  }
 0x126   : > { %868 = vsyncadd (%p703_p2), %s495_s28, 4294967168  ;;  %s17_s19 = sadd.s32 1, %s899_s19   ;;  %s1132_s12 = smov %s875_s13 }
 0x127   : > { %p14_p4 = scmp.ge.s32.totalorder %s17_s19, 6   ;;  %s1133_s13 = smov %s879_s14 }
 0x128   : > { %s1134_s14 = smov %s1006_s5  ;;  %s1135_s15 = smov %s891_s17 }
 0x129   : > { %s1136_s16 = smov %s895_s18  ;;  %s1137_s17 = smov %s1140_s22 }
 0x12a   : > { %s1138_s18 = smov %s1144_s23  ;;  %16 = sbr.rel (!%p14_p4) target bundleno = 6 (0x6), region = 77 }
 0x12f   :  { %500 = vsyncpa [#allocation3], 1 }
 0x130   :  { %502 = vsyncpa [#allocation3 + $0x1], 1 }
 0x131   :  { %503 = vsyncpa [#allocation4], 1 }
 0x132   :  { %505 = vsyncpa [#allocation4 + $0x1], 1 }

</bundles_post_ra>
